<compile_context>
chip_gen: v7x
topology: tpu7x:2x2x1
jax: 0.10.0
libtpu: 0.0.40
codegen_flags: <defaults>
</compile_context>

<pallas_src>
import jax
import jax.numpy as jnp
from jax.experimental import pallas as pl
from jax.experimental.pallas import tpu as pltpu

W0 = 0.01          # fixed (non-learnable) mixing weight, set in forward()
C1 = 1.0 - W0      # compile-time constant


def asau_kernel(w_ref, x_ref, o_ref):
    # w_ref: SMEM (2,) float32 -> [s1 = (1-w0)*w1, w2]
    s1 = w_ref[0]
    w2 = w_ref[1]
    x = x_ref[...]
    z = s1 * x
    # softplus(beta=1, threshold=20): z > 20 -> z, else log1p(exp(z)).
    # For z in (20, ~88] exp may hit inf in the dead branch; log1p(inf)=inf is
    # discarded by the where, so no NaN can be produced.
    sp = jnp.where(z > 20.0, z, jnp.log1p(jnp.exp(z)))
    o_ref[...] = W0 * x + C1 * x * jnp.tanh(w2 * sp)


def _pick_lanes(n):
    """Widest lane dim from {1024,512,256,128} that divides n (0 if none)."""
    for lanes in (1024, 512, 256, 128):
        if n % lanes == 0:
            return lanes
    return 0


def asau_forward(x, w1, w2):
    """x: float32 array of any shape (e.g. NCHW). Returns same shape/dtype."""
    orig_shape = x.shape
    n = x.size

    lanes = _pick_lanes(n)
    pad = 0
    x_flat = x.reshape(-1)
    if lanes == 0:
        # Ragged fallback: pad only the tail (rare; common NCHW sizes divide).
        lanes = 128
        rows = -(-n // lanes)
        pad = rows * lanes - n
        x_flat = jnp.pad(x_flat, (0, pad))
    rows = x_flat.size // lanes
    x2d = x_flat.reshape(rows, lanes)

    # Block ~2 MiB (f32): rows_per_block * lanes * 4 ~= 2 MiB, multiple of 8.
    bytes_per_row = lanes * 4
    tile_rows = max(8, (2 * 1024 * 1024) // bytes_per_row)
    tile_rows = (tile_rows // 8) * 8
    if rows <= tile_rows:
        tile_rows = rows  # full-extent block (allowed even if not %8)
    grid = (pl.cdiv(rows, tile_rows),)

    # Precompute s1 = (1-w0)*w1 on the host; pass [s1, w2] through SMEM.
    w = jnp.stack(
        [jnp.asarray(w1, jnp.float32) * C1, jnp.asarray(w2, jnp.float32)]
    )

    out2d = pl.pallas_call(
        asau_kernel,
        out_shape=jax.ShapeDtypeStruct((rows, lanes), x.dtype),
        grid=grid,
        in_specs=[
            pl.BlockSpec(memory_space=pltpu.SMEM),              # [s1, w2]
            pl.BlockSpec((tile_rows, lanes), lambda i: (i, 0)),  # x tile
        ],
        out_specs=pl.BlockSpec((tile_rows, lanes), lambda i: (i, 0)),
        compiler_params=pltpu.CompilerParams(
            dimension_semantics=("parallel",),
        ),
    )(w, x2d)

    out = out2d.reshape(-1)
    if pad:
        out = out[:n]
    return out.reshape(orig_shape)


if __name__ == "__main__":
    key = jax.random.PRNGKey(0)
    x = jax.random.normal(key, (2, 4, 16, 16), dtype=jnp.float32)

    # Deterministic parameter init, matching nn.Parameter(torch.tensor(1.0))
    w1 = jnp.float32(1.0)
    w2 = jnp.float32(1.0)

    out = asau_forward(x, w1, w2)
    out = jax.block_until_ready(out)

    # Sanity check against a pure-JAX reference.
    z = (1.0 - W0) * w1 * x
    sp = jnp.where(z > 20.0, z, jnp.log1p(jnp.exp(jnp.minimum(z, 20.0))))
    ref = W0 * x + (1.0 - W0) * x * jnp.tanh(w2 * sp)
    assert out.shape == x.shape
    assert jnp.allclose(out, ref, atol=1e-6, rtol=1e-6)

    print("KERNEL_OK")
</pallas_src>

<mosaic_0001>
module attributes {stable_mosaic.version = 11 : i64} {
  func.func @asau_kernel(%arg0: i32, %arg1: memref<2xf32, #tpu.memory_space<smem>>, %arg2: memref<2x1024xf32, #tpu.memory_space<vmem>>, %arg3: memref<2x1024xf32, #tpu.memory_space<vmem>>) attributes {dimension_semantics = [#tpu.dimension_semantics<parallel>], iteration_bounds = array<i64: 1>, scalar_prefetch = 0 : i64, scratch_operands = 0 : i64, tpu.core_type = #tpu.core_type<tc>, window_params = [{transform_indices = @transform_0, window_bounds = array<i64: 2>}, {transform_indices = @transform_1, window_bounds = array<i64: 2, 1024>}, {transform_indices = @transform_2, window_bounds = array<i64: 2, 1024>}]} {
    %c0 = arith.constant 0 : index
    %0 = memref.load %arg1[%c0] : memref<2xf32, #tpu.memory_space<smem>>
    %c1 = arith.constant 1 : index
    %1 = memref.load %arg1[%c1] : memref<2xf32, #tpu.memory_space<smem>>
    %c0_0 = arith.constant 0 : index
    %c0_1 = arith.constant 0 : index
    %2 = vector.load %arg2[%c0_0, %c0_1] : memref<2x1024xf32, #tpu.memory_space<vmem>>, vector<2x1024xf32>
    %3 = vector.broadcast %0 : f32 to vector<2x1024xf32>
    %4 = arith.mulf %3, %2 : vector<2x1024xf32>
    %cst = arith.constant 2.000000e+01 : f32
    %5 = vector.broadcast %cst : f32 to vector<2x1024xf32>
    %6 = arith.cmpf ogt, %4, %5 : vector<2x1024xf32>
    %7 = math.exp %4 : vector<2x1024xf32>
    %8 = math.log1p %7 : vector<2x1024xf32>
    %9 = arith.select %6, %4, %8 : vector<2x1024xi1>, vector<2x1024xf32>
    %cst_2 = arith.constant 0.00999999977 : f32
    %10 = vector.broadcast %cst_2 : f32 to vector<2x1024xf32>
    %11 = arith.mulf %10, %2 : vector<2x1024xf32>
    %cst_3 = arith.constant 9.900000e-01 : f32
    %12 = vector.broadcast %cst_3 : f32 to vector<2x1024xf32>
    %13 = arith.mulf %12, %2 : vector<2x1024xf32>
    %14 = vector.broadcast %1 : f32 to vector<2x1024xf32>
    %15 = arith.mulf %14, %9 : vector<2x1024xf32>
    %16 = math.tanh %15 : vector<2x1024xf32>
    %17 = arith.mulf %13, %16 : vector<2x1024xf32>
    %18 = arith.addf %11, %17 : vector<2x1024xf32>
    %c0_4 = arith.constant 0 : index
    %c0_5 = arith.constant 0 : index
    %19 = vector.load %arg3[%c0_4, %c0_5] : memref<2x1024xf32, #tpu.memory_space<vmem>>, vector<2x1024xf32>
    tpu.vector_store %arg3[%c0_4, %c0_5], %18 {strides = array<i32>} : memref<2x1024xf32, #tpu.memory_space<vmem>>, vector<2x1024xf32>,
    return
  }
  func.func @transform_0(%arg0: i32) -> i32 {
    %c0_i32 = arith.constant 0 : i32
    %c0_i32_0 = arith.constant 0 : i32
    return %c0_i32 : i32
  }
  func.func @transform_1(%arg0: i32) -> (i32, i32) {
    %c0_i32 = arith.constant 0 : i32
    %c0_i32_0 = arith.constant 0 : i32
    return %arg0, %c0_i32 : i32, i32
  }
  func.func @transform_2(%arg0: i32) -> (i32, i32) {
    %c0_i32 = arith.constant 0 : i32
    %c0_i32_0 = arith.constant 0 : i32
    return %arg0, %c0_i32 : i32, i32
  }
}

</mosaic_0001>

<bundles_post_ra>
// kernel: tpu_custom_call.1
= control target key start
LH: loop header
LB: loop body
LE: loop exit
PB: predicated region body
PF: predicated region fallthrough
CT: control target
= control target key end

     0   :  { %7 = vsyncpa [#allocation5], 0  ;;  %s229_s0 = inlined_call_operand.hbm [shape: f32[2], index: 0, kind: input, shape index: {}]   ;;  %s230_s1 = inlined_call_operand.hbm [shape: f32[2,1024], index: 1, kind: input, shape index: {}]   ;;  %s231_s2 = inlined_call_operand.hbm [shape: f32[2,1024], index: 2, kind: output, shape index: {}]  }
   0x1   :  { %8 = vsyncpa [#allocation3], 0 }
   0x2   :  { %9 = vsyncpa [#allocation4], 0  ;;  %s115_s11 = scalar_lea.hbm %s229_s0, 16 }
   0x3   :  { %p116_p0 = scmp.ne.s32.totalorder %s229_s0, %s115_s11  ;;  %p119_p1 = scmp.lt.u32.totalorder %s115_s11, %s229_s0 }
   0x5   :  { %p121_p2 = pnand %p119_p1, %p116_p0 }
   0x7   :  { %124 = shalt.err (!%p121_p2)
}
   0x8   :  { %s175_s16 = smov [#allocation2]   ;;  %s176_s19 = smov [#allocation6]  }
   0x9   :  { %17 = dma.hbm_to_smem %s229_s0, 16, %s175_s16, [#allocation5]  }
   0xa   :  { %s24_s20 = sshll.u32 %s176_s19, 4  ;;  %s125_s23 = scalar_lea.hbm %s230_s1, 256  ;;  %s25_s20 = int_to_ptr.vmem [resolvable:$true] %s24_s20 }
   0xb   :  { %p126_p3 = scmp.ne.s32.totalorder %s230_s1, %s125_s23  ;;  %p129_p4 = scmp.lt.u32.totalorder %s125_s23, %s230_s1 }
   0xd   :  { %p131_p5 = pnand %p129_p4, %p126_p3 }
   0xf   :  { %134 = shalt.err (!%p131_p5)
}
  0x10   :  { %s135_s28 = scalar_lea.vmem %s25_s20, 256  ;;  %p140_p7 = scmp.lt.s32.totalorder %s25_s20, %s25_s20 }
  0x11   :  { %p136_p6 = scmp.ne.s32.totalorder %s25_s20, %s135_s28  ;;  %p141_p8 = scmp.lt.s32.totalorder %s135_s28, %s135_s28 }
  0x13   :  { %p142_p9 = por %p141_p8, %p140_p7 }
  0x15   :  { %p143_p10 = pnand %p142_p9, %p136_p6 }
  0x17   :  { %146 = shalt.err (!%p143_p10)
}
  0x18   :  { %27 = dma.hbm_to_vmem [thread:$0]  %s230_s1, 256, %s25_s20, [#allocation3]  }
  0x19   :  { %169 = dma.done.wait [#allocation5], 16  }
  0x1a   :  { %170 = vsyncadd [#allocation5], 4294967280 }
  0x1b   :  { %171 = dma.done.wait [#allocation3], 256  }
  0x1c   :  { %172 = vsyncadd [#allocation3], 4294967040 }
  0x1d   :  { %34 = sfence }
  0x1e   :  { %s35_s30 = sld [smem:[#allocation2]]  ;;  %v37_v0 = vld [vmem:[#allocation6] sm:$0xff]  ;;  %v38_v1 = vld [vmem:[#allocation6 + $0x8] sm:$0xff]  ;;  %s99_s1 = sld [smem:[#allocation2 + $0x1]] }
  0x1f   :  { %v70_v30 = vmul.f32 0.99, %v37_v0  ;;  %v71_v31 = vmul.f32 0.99, %v38_v1  ;;  %v68_v32 = vmul.f32 0.01, %v37_v0 }
  0x20   :  { %v69_v34 = vmul.f32 0.01, %v38_v1  ;;  %s177_s3 = smov [#allocation7]  }
  0x21   :  { %s89_s4 = sshll.u32 %s177_s3, 4  ;;  %s90_s4 = int_to_ptr.vmem [resolvable:$true] %s89_s4 }
  0x22   :  { %s147_s5 = scalar_lea.vmem %s90_s4, 256  ;;  %p152_p12 = scmp.lt.s32.totalorder %s90_s4, %s90_s4 }
  0x23   :  { %p148_p11 = scmp.ne.s32.totalorder %s90_s4, %s147_s5  ;;  %p153_p13 = scmp.lt.s32.totalorder %s147_s5, %s147_s5 }
  0x24   :  { %v39_v2 = vstv %s35_s30  ;;  %v72_v22 = vstv %s99_s1 }
  0x25   :  { %v40_v3 = vmul.f32 %v39_v2, %v37_v0  ;;  %v41_v4 = vmul.f32 %v39_v2, %v38_v1  ;;  %p154_p0 = por %p153_p13, %p152_p12 }
  0x27   :  { %v44_v5 = vmul.f32 1.442695, %v40_v3  ;;  %v46_v6 = vmul.f32 1.442695, %v41_v4  ;;  %vm42_vm1 = vcmp.gt.f32.partialorder %v40_v3, 20.0  ;;  %vm43_vm3 = vcmp.gt.f32.partialorder %v41_v4, 20.0  ;;  %p155_p1 = pnand %p154_p0, %p148_p11 }
  0x29   :  { %103 = vpow2.f32 %v44_v5 }
  0x2a   :  { %105 = vpow2.f32 %v46_v6 }
  0x33   :  { %v104_v7 = vpop.eup %103 }
  0x34   :  { %v106_v8 = vpop.eup %105  ;;  %v48_v9 = vadd.f32 1.0, %v104_v7  ;;  %v51_v11 = vmul.f32 -0.5, %v104_v7  ;;  %v54_v14 = vand.u32 2147483647, %v104_v7 }
  0x35   :  { %v57_v10 = vadd.f32 1.0, %v106_v8  ;;  %v60_v12 = vmul.f32 -0.5, %v106_v8  ;;  %v63_v16 = vand.u32 2147483647, %v106_v8 }
  0x36   :  { %107 = vlog2.f32 %v48_v9  ;;  %v52_v13 = vadd.f32 1.0, %v51_v11  ;;  %vm55_vm0 = vcmp.lt.f32.partialorder %v54_v14, 0.0004427343 }
  0x37   :  { %109 = vlog2.f32 %v57_v10  ;;  %v61_v15 = vadd.f32 1.0, %v60_v12  ;;  %vm64_vm2 = vcmp.lt.f32.partialorder %v63_v16, 0.0004427343 }
  0x38   :  { %v53_v17 = vmul.f32 %v104_v7, %v52_v13 }
  0x39   :  { %v62_v19 = vmul.f32 %v106_v8, %v61_v15 }
  0x40   :  { %v108_v18 = vpop.eup %107 }
  0x41   :  { %v110_v20 = vpop.eup %109  ;;  %v50_v21 = vmul.f32 0.6931472, %v108_v18 }
  0x42   :  { %v59_v23 = vmul.f32 0.6931472, %v110_v20 }
  0x43   :  { %v56_v24 = vsel %vm55_vm0, %v53_v17, %v50_v21 }
  0x44   :  { %v66_v25 = vsel %vm42_vm1, %v40_v3, %v56_v24  ;;  %v65_v26 = vsel %vm64_vm2, %v62_v19, %v59_v23 }
  0x45   :  { %v73_v27 = vmul.f32 %v72_v22, %v66_v25  ;;  %v67_v28 = vsel %vm43_vm3, %v41_v4, %v65_v26 }
  0x46   :  { %v74_v29 = vmul.f32 %v72_v22, %v67_v28 }
  0x47   :  { %111 = vtanh.f32 %v73_v27 }
  0x48   :  { %113 = vtanh.f32 %v74_v29 }
  0x51   :  { %v112_v33 = vpop.eup %111 }
  0x52   :  { %v114_v35 = vpop.eup %113  ;;  %v77_v36 = vmul.f32 %v112_v33, %v70_v30 }
  0x53   :  { %v78_v37 = vmul.f32 %v114_v35, %v71_v31 }
  0x54   :  { %v79_v38 = vadd.f32 %v77_v36, %v68_v32 }
  0x55   :  { %v80_v39 = vadd.f32 %v78_v37, %v69_v34 }
  0x56   :  { %81 = vst [vmem:[#allocation7] sm:$0xff] %v79_v38 }
  0x57   :  { %82 = vst [vmem:[#allocation7 + $0x8] sm:$0xff] %v80_v39 }
  0x58   :  { %158 = shalt.err (!%p155_p1)
}
  0x59   :  { %s159_s8 = scalar_lea.hbm %s231_s2, 256 }
  0x5a   :  { %p160_p2 = scmp.ne.s32.totalorder %s231_s2, %s159_s8  ;;  %p163_p3 = scmp.lt.u32.totalorder %s159_s8, %s231_s2 }
  0x5c   :  { %p165_p4 = pnand %p163_p3, %p160_p2 }
  0x5e   :  { %168 = shalt.err (!%p165_p4)
}
  0x5f   :  { %92 = dma.vmem_to_hbm [thread:$0]  %s90_s4, 256, %s231_s2, [#allocation4]  }
  0x60   :  { %173 = dma.done.wait [#allocation4], 256  }
  0x61   :  { %174 = vsyncadd [#allocation4], 4294967040 }
  0x62   :  { %96 = vsyncpa [#allocation3], 1 }
  0x63   :  { %97 = vsyncpa [#allocation4], 1 }
  0x64   :  { %98 = vsyncpa [#allocation5], 1 }

</bundles_post_ra>
